<compile_context>
chip_gen: v5e
topology: v5e:2x2
jax: 0.10.0
libtpu: 0.0.40
codegen_flags: <defaults>
</compile_context>

<pallas_src>
import functools

import jax
import jax.numpy as jnp
from jax import lax
from jax.experimental import pallas as pl
from jax.experimental.pallas import tpu as pltpu


def _shift_kernel(shift_ref, x_ref, o_ref, *, pad, blk, nchan, h, w):
    """Shift `blk` samples per grid step.

    shift_ref : SMEM (2*grid*blk,) int32, [sx_0, sy_0, sx_1, sy_1, ...]
    x_ref     : VMEM block (blk, nchan*h, w)  -- unpadded input samples
    o_ref     : VMEM block (blk, nchan*h, w)  -- shifted output samples
    """
    i0 = pl.program_id(0)
    dtype = x_ref.dtype

    # Gather iotas: sample-independent -> hoisted out of the sample loop.
    kk_c = lax.broadcasted_iota(jnp.int32, (w, w), 0)  # source column k
    vv_c = lax.broadcasted_iota(jnp.int32, (w, w), 1)  # output column v
    yy_r = lax.broadcasted_iota(jnp.int32, (h, h), 0)  # output row y
    jj_r = lax.broadcasted_iota(jnp.int32, (h, h), 1)  # source row j

    @pl.loop(0, blk)
    def _(b):
        g = i0 * blk + b
        sx = shift_ref[2 * g]        # column offset into the padded image
        sy = shift_ref[2 * g + 1]    # row offset into the padded image
        dx = sx - pad                # signed column shift of the unpadded image
        dy = sy - pad                # signed row shift

        # One-hot gather matrices, built once per sample (not per channel):
        #   (slab @ sel_c)[r, v] == slab[r, clamp(v + dx, 0, w-1)]
        #   (sel_r @ img)[y, :]  == img[clamp(y + dy, 0, h-1), :]
        sel_c = (kk_c == jnp.clip(vv_c + dx, 0, w - 1)).astype(dtype)
        sel_r = (jj_r == jnp.clip(yy_r + dy, 0, h - 1)).astype(dtype)

        # Column shift with edge replication, batched over ALL channels:
        # one (C*H, W) @ (W, W) matmul per sample.
        mid = jnp.dot(x_ref[b], sel_c,
                      preferred_element_type=jnp.float32).astype(dtype)

        # Row shift with edge replication, per channel (static slices), written
        # straight into the pipelined output block.
        for ch in range(nchan):
            r0 = ch * h
            o_ref[b, r0:r0 + h, :] = jnp.dot(
                sel_r, mid[r0:r0 + h, :],
                preferred_element_type=jnp.float32).astype(dtype)


def _shift_crop(x, shift, pad):
    """out[i, c, y, v] = replicate_pad(x)[i, c, y + shift[i,1], v + shift[i,0]]."""
    n, c, h, w = x.shape
    dt = x.dtype
    itemsize = jnp.dtype(dt).itemsize

    # View as (N, C*H, W): free (row-major contiguous merge); lets the column
    # gather batch over channels and pads C*H (not each H) to the sublane tile.
    rows = c * h
    x2 = x.reshape(n, rows, w)

    # (8,128)-tile-padded per-sample VMEM bytes (sub-32-bit dtypes sublane-pack).
    row_tile = 8 * max(1, 4 // itemsize)
    prow = -(-rows // row_tile) * row_tile
    pcol = -(-w // 128) * 128
    sample_bytes = prow * pcol * itemsize

    # 2 specs (in+out) x 2 pipeline buffers must fit under the scoped VMEM
    # limit (raised to 32 MiB below, safe on v5e/v6e/v7x) with headroom for the
    # one-hot matrices and internal scratch.  This caps blk at 16 for 9x84x84
    # f32 frames, as the v7x VMEM budget requires.
    vmem_budget = 26 * 1024 * 1024
    cands = [b for b in (16, 8, 4, 2, 1) if 4 * b * sample_bytes <= vmem_budget]
    if not cands:
        cands = [1]
    # Prefer >= 2 grid steps (v7x megacore: both TensorCores get work) while
    # keeping blk as large as possible; cdiv grid keeps blk large for odd n
    # (tail-block writes are masked by Pallas).
    blk = next((b for b in cands if pl.cdiv(n, b) >= 2), cands[-1])
    grid = pl.cdiv(n, blk)

    # Pad the prefetched shift table to the grid extent so tail-block sample
    # indices stay in bounds in SMEM (their outputs are dropped anyway).
    shift_i32 = jnp.pad(shift.astype(jnp.int32), ((0, grid * blk - n), (0, 0)))

    kernel = functools.partial(
        _shift_kernel, pad=pad, blk=blk, nchan=c, h=h, w=w)

    out2 = pl.pallas_call(
        kernel,
        out_shape=jax.ShapeDtypeStruct((n, rows, w), dt),
        grid_spec=pltpu.PrefetchScalarGridSpec(
            num_scalar_prefetch=1,
            grid=(grid,),
            in_specs=[pl.BlockSpec((blk, rows, w), lambda i, s: (i, 0, 0))],
            out_specs=pl.BlockSpec((blk, rows, w), lambda i, s: (i, 0, 0)),
        ),
        compiler_params=pltpu.CompilerParams(
            dimension_semantics=("parallel",),
            vmem_limit_bytes=32 * 1024 * 1024,
        ),
        cost_estimate=pl.CostEstimate(
            flops=2 * grid * blk * c * h * w * (h + w),  # one-hot gather matmuls
            transcendentals=0,
            bytes_accessed=2 * n * c * h * w * itemsize,
        ),
    )(shift_i32.reshape(-1), x2)

    return out2.reshape(n, c, h, w)


def random_shifts_aug(x, pad, key):
    n, c, h, w = x.shape
    assert h == w
    # torch.randint(0, 2*pad+1, (n,1,1,2)): [:, 0] is the x (column) shift,
    # [:, 1] is the y (row) shift into the replicate-padded image.
    shift = jax.random.randint(key, (n, 2), 0, 2 * pad + 1, dtype=jnp.int32)
    return _shift_crop(x, shift, pad)


if __name__ == "__main__":
    key = jax.random.PRNGKey(0)
    kx, ks = jax.random.split(key)

    pad = 4
    x = jax.random.normal(kx, (2, 4, 16, 16), dtype=jnp.float32)

    out = jax.block_until_ready(random_shifts_aug(x, pad, ks))

    # Reference: replicate-pad + per-sample integer crop, which is exactly what
    # grid_sample(align_corners=False, padding_mode='zeros') computes here.
    n, c, h, w = x.shape
    shift = jax.random.randint(ks, (n, 2), 0, 2 * pad + 1, dtype=jnp.int32)
    xp = jnp.pad(x, ((0, 0), (0, 0), (pad, pad), (pad, pad)), mode="edge")
    ref = jnp.stack([
        jax.lax.dynamic_slice(xp[i], (0, shift[i, 1], shift[i, 0]), (c, h, w))
        for i in range(n)
    ])

    assert out.shape == x.shape and out.dtype == x.dtype
    # The one-hot gathers use 0/1 weights on the MXU: exact for bf16 inputs;
    # for f32 the default MXU path rounds through bf16 (<~0.4% rel), covered
    # by the tolerance below.
    assert jnp.allclose(out, ref, rtol=1e-2, atol=1e-2), \
        "Pallas output != reference crop"
    print("KERNEL_OK")
</pallas_src>

<mosaic_0001>
module attributes {stable_mosaic.version = 11 : i64} {
  func.func @_shift_kernel(%arg0: i32, %arg1: memref<4xi32, #tpu.memory_space<smem>>, %arg2: memref<1x64x16xf32, #tpu.memory_space<vmem>>, %arg3: memref<1x64x16xf32, #tpu.memory_space<vmem>>) attributes {dimension_semantics = [#tpu.dimension_semantics<parallel>], iteration_bounds = array<i64: 2>, scalar_prefetch = 1 : i64, scratch_operands = 0 : i64, tpu.core_type = #tpu.core_type<tc>, window_params = [{transform_indices = @transform_0, window_bounds = array<i64: 1, 64, 16>}, {transform_indices = @transform_1, window_bounds = array<i64: 1, 64, 16>}]} {
    %0 = tpu.iota {dimensions = array<i32: 0>} : vector<16x16xi32>
    %1 = tpu.iota {dimensions = array<i32: 1>} : vector<16x16xi32>
    %2 = tpu.iota {dimensions = array<i32: 0>} : vector<16x16xi32>
    %3 = tpu.iota {dimensions = array<i32: 1>} : vector<16x16xi32>
    %c0_i32 = arith.constant 0 : i32
    %c1_i32 = arith.constant 1 : i32
    %4 = arith.muli %c0_i32, %c1_i32 : i32
    %c0_i32_0 = arith.constant 0 : i32
    %5 = arith.addi %c0_i32_0, %4 : i32
    %c1_i32_1 = arith.constant 1 : i32
    %6 = arith.muli %arg0, %c1_i32_1 : i32
    %7 = arith.addi %6, %5 : i32
    %c2_i32 = arith.constant 2 : i32
    %8 = arith.muli %c2_i32, %7 : i32
    %9 = arith.index_cast %8 : i32 to index
    %10 = memref.load %arg1[%9] : memref<4xi32, #tpu.memory_space<smem>>
    %c2_i32_2 = arith.constant 2 : i32
    %11 = arith.muli %c2_i32_2, %7 : i32
    %c1_i32_3 = arith.constant 1 : i32
    %12 = arith.addi %11, %c1_i32_3 : i32
    %13 = arith.index_cast %12 : i32 to index
    %14 = memref.load %arg1[%13] : memref<4xi32, #tpu.memory_space<smem>>
    %c4_i32 = arith.constant 4 : i32
    %15 = arith.subi %10, %c4_i32 : i32
    %c4_i32_4 = arith.constant 4 : i32
    %16 = arith.subi %14, %c4_i32_4 : i32
    %17 = vector.broadcast %15 : i32 to vector<16x16xi32>
    %18 = arith.addi %1, %17 : vector<16x16xi32>
    %c0_i32_5 = arith.constant 0 : i32
    %c15_i32 = arith.constant 15 : i32
    %19 = vector.broadcast %c0_i32_5 : i32 to vector<16x16xi32>
    %20 = arith.maxsi %19, %18 : vector<16x16xi32>
    %21 = vector.broadcast %c15_i32 : i32 to vector<16x16xi32>
    %22 = arith.minsi %21, %20 : vector<16x16xi32>
    %23 = arith.cmpi eq, %0, %22 : vector<16x16xi32>
    %24 = arith.extui %23 : vector<16x16xi1> to vector<16x16xi32>
    %25 = arith.sitofp %24 : vector<16x16xi32> to vector<16x16xf32>
    %26 = vector.broadcast %16 : i32 to vector<16x16xi32>
    %27 = arith.addi %2, %26 : vector<16x16xi32>
    %c0_i32_6 = arith.constant 0 : i32
    %c15_i32_7 = arith.constant 15 : i32
    %28 = vector.broadcast %c0_i32_6 : i32 to vector<16x16xi32>
    %29 = arith.maxsi %28, %27 : vector<16x16xi32>
    %30 = vector.broadcast %c15_i32_7 : i32 to vector<16x16xi32>
    %31 = arith.minsi %30, %29 : vector<16x16xi32>
    %32 = arith.cmpi eq, %3, %31 : vector<16x16xi32>
    %33 = arith.extui %32 : vector<16x16xi1> to vector<16x16xi32>
    %34 = arith.sitofp %33 : vector<16x16xi32> to vector<16x16xf32>
    %35 = arith.index_cast %5 : i32 to index
    %c0 = arith.constant 0 : index
    %c0_8 = arith.constant 0 : index
    %36 = vector.load %arg2[%35, %c0, %c0_8] : memref<1x64x16xf32, #tpu.memory_space<vmem>>, vector<1x64x16xf32>
    %37 = vector.shape_cast %36 : vector<1x64x16xf32> to vector<64x16xf32>
    %cst = arith.constant dense<0.000000e+00> : vector<64x16xf32>
    %38 = tpu.matmul %37, %25, %cst {dimension_numbers = #tpu.dot_dimension_numbers<[1], [0], [0], [1], [0, 0, 1, 1], [], []>} : vector<64x16xf32>, vector<16x16xf32>, vector<64x16xf32> -> vector<64x16xf32>
    %39 = vector.extract_strided_slice %38 {offsets = [0, 0], sizes = [16, 16], strides = [1, 1]} : vector<64x16xf32> to vector<16x16xf32>
    %cst_9 = arith.constant dense<0.000000e+00> : vector<16x16xf32>
    %40 = tpu.matmul %34, %39, %cst_9 {dimension_numbers = #tpu.dot_dimension_numbers<[1], [0], [0], [1], [0, 0, 1, 1], [], []>} : vector<16x16xf32>, vector<16x16xf32>, vector<16x16xf32> -> vector<16x16xf32>
    %41 = arith.index_cast %5 : i32 to index
    %c0_10 = arith.constant 0 : index
    %c0_11 = arith.constant 0 : index
    %42 = vector.load %arg3[%41, %c0_10, %c0_11] : memref<1x64x16xf32, #tpu.memory_space<vmem>>, vector<1x16x16xf32>
    %43 = vector.shape_cast %42 : vector<1x16x16xf32> to vector<16x16xf32>
    %44 = vector.shape_cast %40 : vector<16x16xf32> to vector<1x16x16xf32>
    tpu.vector_store %arg3[%41, %c0_10, %c0_11], %44 {strides = array<i32>} : memref<1x64x16xf32, #tpu.memory_space<vmem>>, vector<1x16x16xf32>,
    %45 = vector.extract_strided_slice %38 {offsets = [16, 0], sizes = [16, 16], strides = [1, 1]} : vector<64x16xf32> to vector<16x16xf32>
    %cst_12 = arith.constant dense<0.000000e+00> : vector<16x16xf32>
    %46 = tpu.matmul %34, %45, %cst_12 {dimension_numbers = #tpu.dot_dimension_numbers<[1], [0], [0], [1], [0, 0, 1, 1], [], []>} : vector<16x16xf32>, vector<16x16xf32>, vector<16x16xf32> -> vector<16x16xf32>
    %47 = arith.index_cast %5 : i32 to index
    %c16 = arith.constant 16 : index
    %c0_13 = arith.constant 0 : index
    %48 = vector.load %arg3[%47, %c16, %c0_13] : memref<1x64x16xf32, #tpu.memory_space<vmem>>, vector<1x16x16xf32>
    %49 = vector.shape_cast %48 : vector<1x16x16xf32> to vector<16x16xf32>
    %50 = vector.shape_cast %46 : vector<16x16xf32> to vector<1x16x16xf32>
    tpu.vector_store %arg3[%47, %c16, %c0_13], %50 {strides = array<i32>} : memref<1x64x16xf32, #tpu.memory_space<vmem>>, vector<1x16x16xf32>,
    %51 = vector.extract_strided_slice %38 {offsets = [32, 0], sizes = [16, 16], strides = [1, 1]} : vector<64x16xf32> to vector<16x16xf32>
    %cst_14 = arith.constant dense<0.000000e+00> : vector<16x16xf32>
    %52 = tpu.matmul %34, %51, %cst_14 {dimension_numbers = #tpu.dot_dimension_numbers<[1], [0], [0], [1], [0, 0, 1, 1], [], []>} : vector<16x16xf32>, vector<16x16xf32>, vector<16x16xf32> -> vector<16x16xf32>
    %53 = arith.index_cast %5 : i32 to index
    %c32 = arith.constant 32 : index
    %c0_15 = arith.constant 0 : index
    %54 = vector.load %arg3[%53, %c32, %c0_15] : memref<1x64x16xf32, #tpu.memory_space<vmem>>, vector<1x16x16xf32>
    %55 = vector.shape_cast %54 : vector<1x16x16xf32> to vector<16x16xf32>
    %56 = vector.shape_cast %52 : vector<16x16xf32> to vector<1x16x16xf32>
    tpu.vector_store %arg3[%53, %c32, %c0_15], %56 {strides = array<i32>} : memref<1x64x16xf32, #tpu.memory_space<vmem>>, vector<1x16x16xf32>,
    %57 = vector.extract_strided_slice %38 {offsets = [48, 0], sizes = [16, 16], strides = [1, 1]} : vector<64x16xf32> to vector<16x16xf32>
    %cst_16 = arith.constant dense<0.000000e+00> : vector<16x16xf32>
    %58 = tpu.matmul %34, %57, %cst_16 {dimension_numbers = #tpu.dot_dimension_numbers<[1], [0], [0], [1], [0, 0, 1, 1], [], []>} : vector<16x16xf32>, vector<16x16xf32>, vector<16x16xf32> -> vector<16x16xf32>
    %59 = arith.index_cast %5 : i32 to index
    %c48 = arith.constant 48 : index
    %c0_17 = arith.constant 0 : index
    %60 = vector.load %arg3[%59, %c48, %c0_17] : memref<1x64x16xf32, #tpu.memory_space<vmem>>, vector<1x16x16xf32>
    %61 = vector.shape_cast %60 : vector<1x16x16xf32> to vector<16x16xf32>
    %62 = vector.shape_cast %58 : vector<16x16xf32> to vector<1x16x16xf32>
    tpu.vector_store %arg3[%59, %c48, %c0_17], %62 {strides = array<i32>} : memref<1x64x16xf32, #tpu.memory_space<vmem>>, vector<1x16x16xf32>,
    %c1_i32_18 = arith.constant 1 : i32
    return
  }
  func.func @transform_0(%arg0: i32, %arg1: memref<4xi32, #tpu.memory_space<smem>>) -> (i32, i32, i32) {
    %c0_i32 = arith.constant 0 : i32
    %c0_i32_0 = arith.constant 0 : i32
    %c0_i32_1 = arith.constant 0 : i32
    return %arg0, %c0_i32, %c0_i32_0 : i32, i32, i32
  }
  func.func @transform_1(%arg0: i32, %arg1: memref<4xi32, #tpu.memory_space<smem>>) -> (i32, i32, i32) {
    %c0_i32 = arith.constant 0 : i32
    %c0_i32_0 = arith.constant 0 : i32
    %c0_i32_1 = arith.constant 0 : i32
    return %arg0, %c0_i32, %c0_i32_0 : i32, i32, i32
  }
}

</mosaic_0001>

<bundles_post_ra>
// kernel: tpu_custom_call.1
= control target key start
LH: loop header
LB: loop body
LE: loop exit
PB: predicated region body
PF: predicated region fallthrough
CT: control target
= control target key end

     0   :  { %s476_s12 = smov [#allocation3]   ;;  %s550_s0 = inlined_call_operand.vmem [shape: s32[4], index: 0, kind: input, shape index: {}]   ;;  %s551_s1 = inlined_call_operand.vmem [shape: f32[2,64,16], index: 1, kind: input, shape index: {}]   ;;  %s552_s2 = inlined_call_operand.vmem [shape: f32[2,64,16], index: 2, kind: output, shape index: {}]  }
   0x1   :  { %s8_s11 = sshll.u32 %s550_s0, 4  ;;  %s9_s11 = int_to_ptr.vmem [resolvable:$true] %s8_s11 }
   0x2   :  { %11 = dma.vmem_to_smem %s9_s11, 16, %s476_s12, [#allocation2] }
   0x3   :  { %470 = dma.done.wait [#allocation2], 16 }
   0x4   :  { %471 = vsyncadd [#allocation2], 4294967280 }
   0x5   :  { %14 = sfence }
   0x6   :  { %s497_s13 = smov 0  }
   0x7 LB: > { %s401_s14 = sadd.s32 4294967295, %s474_s13   ;;  %p405_p0 = scmp.ge.s32.totalorder %s474_s13, 1  ;;  %s474_s13 = sphi %s497_s13, %s20_s13  }
   0x8   : > { %p96_p1 = scmp.lt.s32.totalorder %s474_s13, 3 }
   0xa   : > { %p97_p2 = pnand %p405_p0, %p96_p1 }
   0xb   : > { %s410_s0 = sshll.u32 (!%p97_p2), %s401_s14, 1  ;;  %p116_p3 = scmp.lt.s32.totalorder (!%p97_p2), %s401_s14, 1 }
   0xc   : > { %100 = sbr.rel (%p97_p2) target bundleno = 325 (0x145), region = 24  ;;  %s132_s15 = sld [smem:[#allocation3 + %s410_s0]] (!%p97_p2) }
   0xd   : > { %s133_s16 = sadd.s32 (!%p97_p2), 1, %s410_s0 }
   0xe   : > { %s134_s17 = sld [smem:[#allocation3 + %s133_s16]] (!%p97_p2) }
  0x11   : > { %v126_v0 = vlaneseq  ;;  %s554_s14 = smov (!%p116_p3, %s401_s14), 1  ;;  %v477_v11 = vmov 1.0   ;;  %vm174_vm4 = vcmask 130048   ;;  %v478_v27 = vmov 0.0  }
  0x12   : > { %s411_s18 = sadd.s32 4294967292, %s132_s15  ;;  %s437_s20 = sshll.u32 %s554_s14, 6 }
  0x13   : > { %v127_v1 = vshrl.u32 %v126_v0, 7  ;;  %v505_v2 = vand.u32 127, %v126_v0  ;;  %v137_v4 = vstv %s411_s18  ;;  %s120_s23 = scalar_lea.vmem %s551_s1, %s437_s20  ;;  %s125_s26 = scalar_lea.vmem %s552_s2, %s437_s20 }
  0x14   : > { %s412_s19 = sadd.s32 4294967292, %s134_s17  ;;  %v166_v12 = vld [vmem:[%s120_s23] sm:$0xff]  ;;  %v172_v14 = vld [vmem:[%s120_s23 + $0x30] sm:$0xff]  ;;  %v167_v15 = vld [vmem:[%s120_s23 + $0x8] sm:$0xff] }
  0x15   : > { %v128_v3 = vadd.s32 8, %v127_v1  ;;  %v138_v5 = vadd.s32 %v137_v4, %v505_v2  ;;  %v149_v6 = vstv %s412_s19  ;;  %v170_v13 = vld [vmem:[%s120_s23 + $0x20] sm:$0xff]  ;;  %v171_v16 = vld [vmem:[%s120_s23 + $0x28] sm:$0xff]  ;;  %v173_v17 = vld [vmem:[%s120_s23 + $0x38] sm:$0xff] }
  0x16   : > { %v150_v7 = vadd.s32 %v149_v6, %v127_v1  ;;  %v168_v18 = vld [vmem:[%s120_s23 + $0x10] sm:$0xff]  ;;  %v169_v19 = vld [vmem:[%s120_s23 + $0x18] sm:$0xff] }
  0x17   : > { %v151_v8 = vadd.s32 %v149_v6, %v128_v3  ;;  %vm139_vm0 = vcmp.gt.s32.totalorder %v138_v5, 0 }
  0x18   : > { %v140_v9 = vsel %vm139_vm0, %v138_v5, 0  ;;  %vm152_vm5 = vcmp.gt.s32.totalorder %v150_v7, 0 }
  0x19   : > { %vm141_vm1 = vcmp.lt.s32.totalorder %v140_v9, 15  ;;  %v153_v20 = vsel %vm152_vm5, %v150_v7, 0  ;;  %vm154_vm7 = vcmp.gt.s32.totalorder %v151_v8, 0 }
  0x1a   : > { %v142_v10 = vsel %vm141_vm1, %v140_v9, 15  ;;  %vm156_vm6 = vcmp.lt.s32.totalorder %v153_v20, 15  ;;  %v155_v23 = vsel %vm154_vm7, %v151_v8, 0 }
  0x1b   : > { %vm144_vm2 = vcmp.eq.s32.totalorder %v128_v3, %v142_v10  ;;  %vm143_vm3 = vcmp.eq.s32.totalorder %v127_v1, %v142_v10  ;;  %v157_v22 = vsel %vm156_vm6, %v153_v20, 15  ;;  %vm158_vm9 = vcmp.lt.s32.totalorder %v155_v23, 15 }
  0x1c   : > { %417 = vmatpush.msk.msra.mxu0 %vm144_vm2, %v477_v11  ;;  %439 = vmatpush.msk.msra.mxu2 %vm144_vm2, %v477_v11  ;;  %vm160_vm8 = vcmp.eq.s32.totalorder %v505_v2, %v157_v22  ;;  %v159_v29 = vsel %vm158_vm9, %v155_v23, 15 }
  0x1d   : > { %440 = vmatpush.msk.msra.mxu3 %vm144_vm2, %v477_v11  ;;  %v415_v28 = vsel %vm160_vm8, 1.0, %v478_v27  ;;  %vm161_vm10 = vcmp.eq.s32.totalorder %v505_v2, %v159_v29 }
  0x1e   : > { %418 = vmatpush.msk.msra.mxu0 %vm143_vm3, %v477_v11  ;;  %441 = vmatpush.msk.msra.mxu2 %vm143_vm3, %v477_v11  ;;  %v416_v33 = vsel %vm161_vm10, 1.0, %v478_v27 }
  0x1f   : > { %419 = vmatmul.msk.f32.vlgmr.msra.gmra.mxu0 %vm174_vm4, %v166_v12  ;;  %423 = vmatmul.msk.f32.vlgmr.msra.gmra.mxu2 %vm174_vm4, %v170_v13 }
  0x20   : > { %442 = vmatpush.msk.msra.mxu3 %vm143_vm3, %v477_v11 }
  0x21   : > { %425 = vmatmul.msk.f32.vlgmr.msra.gmra.mxu3 %vm174_vm4, %v172_v14 }
  0x27   : > { %420 = vmatmul.msk.f32.gmra.mxu0 %vm174_vm4, %v167_v15  ;;  %424 = vmatmul.msk.f32.gmra.mxu2 %vm174_vm4, %v171_v16 }
  0x29   : > { %426 = vmatmul.msk.f32.gmra.mxu3 %vm174_vm4, %v173_v17 }
  0x2f   : > { %421 = vmatmul.msk.f32.gmra.mxu0 %vm174_vm4, %v168_v18 }
  0x37   : > { %422 = vmatmul.msk.f32.gmra.mxu0 %vm174_vm4, %v169_v19 }
  0x9c   : > { %v216_v21 = vpop.f32.mrf.mxu0 }
  0xa2   : > { %v228_v24 = vpop.f32.mrf.mxu2 }
  0xa4   : > { %v219_v25 = vpop.f32.mrf.mxu0  ;;  %v234_v26 = vpop.f32.mrf.mxu3 }
  0xa5   : > { %260 = vmatpush.msra.mxu1 %v219_v25 }
  0xa7   : > { %261 = vmatpush.msra.mxu1 %v216_v21 }
  0xa8   : > { %427 = vmatmul.msk.f32.vlgmr.msra.gmra.mxu1 %vm174_vm4, %v415_v28 }
  0xaa   : > { %v231_v30 = vpop.f32.mrf.mxu2 }
  0xab   : > { %310 = vmatpush.msrb.mxu3 %v231_v30 }
  0xac   : > { %v222_v31 = vpop.f32.mrf.mxu0  ;;  %v237_v32 = vpop.f32.mrf.mxu3 }
  0xad   : > { %311 = vmatpush.msrb.mxu3 %v228_v24  ;;  %335 = vmatpush.msrb.mxu1 %v237_v32 }
  0xae   : > { %431 = vmatmul.msk.f32.vlgmr.msrb.gmra.mxu3 %vm174_vm4, %v415_v28 }
  0xaf   : > { %336 = vmatpush.msrb.mxu1 %v234_v26 }
  0xb0   : > { %428 = vmatmul.msk.f32.gmra.mxu1 %vm174_vm4, %v416_v33 }
  0xb4   : > { %v225_v34 = vpop.f32.mrf.mxu0 }
  0xb5   : > { %285 = vmatpush.msrb.mxu2 %v225_v34 }
  0xb6   : > { %432 = vmatmul.msk.f32.gmra.mxu3 %vm174_vm4, %v416_v33 }
  0xb7   : > { %286 = vmatpush.msrb.mxu2 %v222_v31 }
  0xb8   : > { %429 = vmatmul.msk.f32.vlgmr.msrb.gmra.mxu2 %vm174_vm4, %v415_v28  ;;  %433 = vmatmul.msk.f32.vlgmr.msrb.gmra.mxu1 %vm174_vm4, %v415_v28 }
  0xc0   : > { %430 = vmatmul.msk.f32.gmra.mxu2 %vm174_vm4, %v416_v33  ;;  %434 = vmatmul.msk.f32.gmra.mxu1 %vm174_vm4, %v416_v33 }
 0x125   : > { %v263_v35 = vpop.f32.mrf.mxu1 }
 0x126   : > { %269 = vst.msk [vmem:[%s125_s26] sm:$0xff] %vm174_vm4, %v263_v35 }
 0x12d   : > { %v266_v36 = vpop.f32.mrf.mxu1 }
 0x12e   : > { %270 = vst.msk [vmem:[%s125_s26 + $0x8] sm:$0xff] %vm174_vm4, %v266_v36 }
 0x131   : > { %v313_v37 = vpop.f32.mrf.mxu3 }
 0x132   : > { %319 = vst.msk [vmem:[%s125_s26 + $0x20] sm:$0xff] %vm174_vm4, %v313_v37 }
 0x135   : > { %v338_v38 = vpop.f32.mrf.mxu1 }
 0x136   : > { %344 = vst.msk [vmem:[%s125_s26 + $0x30] sm:$0xff] %vm174_vm4, %v338_v38 }
 0x139   : > { %v316_v39 = vpop.f32.mrf.mxu3 }
 0x13a   : > { %320 = vst.msk [vmem:[%s125_s26 + $0x28] sm:$0xff] %vm174_vm4, %v316_v39 }
 0x13b   : > { %v288_v40 = vpop.f32.mrf.mxu2 }
 0x13c   : > { %294 = vst.msk [vmem:[%s125_s26 + $0x10] sm:$0xff] %vm174_vm4, %v288_v40 }
 0x13d   : > { %v341_v41 = vpop.f32.mrf.mxu1 }
 0x13e   : > { %345 = vst.msk [vmem:[%s125_s26 + $0x38] sm:$0xff] %vm174_vm4, %v341_v41 }
 0x143   : > { %v291_v42 = vpop.f32.mrf.mxu2 }
 0x144   : > { %295 = vst.msk [vmem:[%s125_s26 + $0x18] sm:$0xff] %vm174_vm4, %v291_v42 }
 0x145 PF: > { %s20_s13 = sadd.s32 1, %s474_s13  }
 0x146   : > { %p17_p4 = scmp.ge.s32.totalorder %s20_s13, 4  }
 0x148   :  { %19 = sbr.rel (!%p17_p4) target bundleno = 7 (0x7), region = 54 }

</bundles_post_ra>
